<compile_context>
chip_gen: v5e
topology: v5e:2x2
jax: 0.10.0
libtpu: 0.0.40
codegen_flags: <defaults>
</compile_context>

<pallas_src>
import functools

import jax
import jax.numpy as jnp
from jax.experimental import pallas as pl
from jax.experimental.pallas import tpu as pltpu


def _round_up(x, m):
    return ((x + m - 1) // m) * m


def _choose_tiles(n):
    """Return (dst_tile, src_tile, padded_N); both tiles divide padded_N."""
    if n <= 128:
        return 128, 128, 128
    if n <= 1024:
        return 256, 512, _round_up(n, 512)
    # Large graphs: (512, 1024) int8 adj tile = 512 KiB per buffer; with the
    # f32 per-step temporaries this stays well inside VMEM on v5e/v6e/v7x.
    return 512, 1024, _round_up(n, 1024)


# --------------------------------------------------------------------------
# Kernel 1: projection + fused attention logits (two lane-dense outputs).
# --------------------------------------------------------------------------
def _gat_proj_kernel(x_ref, w_ref, wlr_ref, feat_ref, sc_ref):
    x = x_ref[...]
    feat_ref[...] = jnp.dot(
        x, w_ref[...], preferred_element_type=jnp.float32
    ).astype(feat_ref.dtype)
    sc_ref[...] = jnp.dot(x, wlr_ref[...], preferred_element_type=jnp.float32)


# --------------------------------------------------------------------------
# Kernel 2: tiled edge-softmax + aggregation with an online softmax.
#   grid = (num_dst_tiles, num_src_tiles); dst "parallel", src "arbitrary".
#   out_ref (f32, resident across src) doubles as the accumulator.
# --------------------------------------------------------------------------
def _gat_attn_kernel(el_ref, er_ref, feat_ref, adj_ref, bias_ref, out_ref,
                     m_ref, l_ref, *, num_heads, out_feats, negative_slope):
    s_idx = pl.program_id(1)
    neg_inf = jnp.float32(-1e30)
    slope = jnp.float32(negative_slope)

    @pl.when(s_idx == 0)
    def _():
        m_ref[...] = jnp.full_like(m_ref, neg_inf)
        l_ref[...] = jnp.zeros_like(l_ref)
        out_ref[...] = jnp.zeros_like(out_ref)

    # Per-step (head-loop-invariant) edge-mask terms, computed once.
    adj_f32 = adj_ref[...].astype(jnp.float32)          # (Td, Ts) 0/1
    neg_bias = (adj_f32 - 1.0) * jnp.float32(1e30)      # 0 on edges, -1e30 off

    el = el_ref[...]                                    # (H, Ts) f32 src logits
    er = er_ref[...]                                    # (Td, H) f32 dst logits
    feat = feat_ref[...]                                # (Ts, H*D) bf16

    # Full-tile loads of the online-softmax state (one load per ref per step).
    m_old = m_ref[...]                                  # (Td, H)
    l_old = l_ref[...]                                  # (Td, H)
    acc_old = out_ref[...]                              # (Td, H*D) f32

    m_cols, l_cols, acc_cols = [], [], []
    for h in range(num_heads):                          # static unroll
        lo, hi = h * out_feats, (h + 1) * out_feats

        # e[dst, src] = leaky_relu(er[dst] + el[src]) + mask bias
        e = er[:, h:h + 1] + el[h:h + 1, :]
        e = jnp.maximum(e, slope * e) + neg_bias        # valid for 0<slope<1

        m_o = m_old[:, h:h + 1]
        m_new = jnp.maximum(m_o, jnp.max(e, axis=-1, keepdims=True))
        scale = jnp.exp(m_o - m_new)
        # Multiplicative 0/1 mask is load-bearing: if a dst row has no edge in
        # this src tile, exp(e - m_new) can be 1 on masked entries.
        p = jnp.exp(e - m_new) * adj_f32                # (Td, Ts) f32

        l_cols.append(scale * l_old[:, h:h + 1]
                      + jnp.sum(p, axis=-1, keepdims=True))
        # TODO(synk): batch the H PV matmuls (head batch dim) if out_feats
        # grows; with D=16 the kernel is VPU/EUP-bound so per-head dots are ok.
        pv = jnp.dot(p.astype(jnp.bfloat16), feat[:, lo:hi],
                     preferred_element_type=jnp.float32)  # (Td, D)
        acc_cols.append(scale * acc_old[:, lo:hi] + pv)
        m_cols.append(m_new)

    # One full-tile store per ref per step (no per-head masked sub-stores).
    m_ref[...] = jnp.concatenate(m_cols, axis=-1)
    l_ref[...] = jnp.concatenate(l_cols, axis=-1)
    out_ref[...] = jnp.concatenate(acc_cols, axis=-1)

    @pl.when(s_idx == pl.num_programs(1) - 1)
    def _():
        bias = bias_ref[...]                            # (H, D) f32
        l_fin = jnp.maximum(l_ref[...], 1e-30)          # (Td, H)
        acc = out_ref[...]                              # (Td, H*D)
        cols = []
        for h in range(num_heads):
            lo, hi = h * out_feats, (h + 1) * out_feats
            inv_l = pl.reciprocal(l_fin[:, h:h + 1], approx=False)
            rst = acc[:, lo:hi] * inv_l + bias[h:h + 1, :]
            rst = jnp.where(rst > 0, rst, jnp.exp(rst) - 1.0)   # ELU
            cols.append(rst)
        out_ref[...] = jnp.concatenate(cols, axis=-1).astype(out_ref.dtype)


# --------------------------------------------------------------------------
# One GAT layer (all heads).  Operates on node-padded (n_pad) arrays.
# --------------------------------------------------------------------------
def gat_layer(x_pad, w_b, wlr_b, bias, adj_pad, *, num_heads, out_feats,
              negative_slope, td, ts, n_pad):
    _, f_in = x_pad.shape
    hd = num_heads * out_feats
    sc_pad = wlr_b.shape[1]                  # = round_up(2H, 128), lane-dense

    # ---- kernel 1: projection + fused logits ------------------------------
    tp = min(n_pad, 512)                     # divides n_pad by construction
    proj_ce = pl.CostEstimate(
        flops=2 * n_pad * f_in * (hd + sc_pad),
        transcendentals=0,
        bytes_accessed=(2 * n_pad * f_in + 2 * f_in * (hd + sc_pad)
                        + 2 * n_pad * hd + 4 * n_pad * sc_pad))
    feat_b, scores = pl.pallas_call(
        _gat_proj_kernel,
        out_shape=(jax.ShapeDtypeStruct((n_pad, hd), jnp.bfloat16),
                   jax.ShapeDtypeStruct((n_pad, sc_pad), jnp.float32)),
        grid_spec=pltpu.PrefetchScalarGridSpec(
            num_scalar_prefetch=0,
            grid=(n_pad // tp,),
            in_specs=[pl.BlockSpec((tp, f_in), lambda i: (i, 0)),
                      pl.BlockSpec((f_in, hd), lambda i: (0, 0)),
                      pl.BlockSpec((f_in, sc_pad), lambda i: (0, 0))],
            out_specs=[pl.BlockSpec((tp, hd), lambda i: (i, 0)),
                       pl.BlockSpec((tp, sc_pad), lambda i: (i, 0))],
        ),
        compiler_params=pltpu.CompilerParams(
            dimension_semantics=("parallel",)),
        cost_estimate=proj_ce,
    )(x_pad, w_b, wlr_b)

    el_t = scores[:, :num_heads].T                     # (H, N_pad): lane = src
    er = scores[:, num_heads:2 * num_heads]            # (N_pad, H): dst logits

    # ---- kernel 2: tiled edge-softmax + aggregation ------------------------
    n_dst, n_src = n_pad // td, n_pad // ts
    vmem_limit = 48 * 1024 * 1024 if td >= 512 else None
    attn_ce = pl.CostEstimate(
        flops=(2 * num_heads * n_pad * n_pad * out_feats
               + 10 * num_heads * n_pad * n_pad),
        transcendentals=num_heads * n_pad * n_pad,
        bytes_accessed=(n_pad * n_pad                      # adj int8
                        + 2 * n_pad * hd * n_dst           # feat re-streamed
                        + 4 * n_pad * hd                   # out f32
                        + 8 * n_pad * num_heads))
    out_p = pl.pallas_call(
        functools.partial(_gat_attn_kernel, num_heads=num_heads,
                          out_feats=out_feats, negative_slope=negative_slope),
        out_shape=jax.ShapeDtypeStruct((n_pad, hd), jnp.float32),
        grid_spec=pltpu.PrefetchScalarGridSpec(
            num_scalar_prefetch=0,
            grid=(n_dst, n_src),
            in_specs=[
                pl.BlockSpec((num_heads, ts), lambda d, s: (0, s)),      # el
                pl.BlockSpec((td, num_heads), lambda d, s: (d, 0)),      # er
                pl.BlockSpec((ts, hd), lambda d, s: (s, 0)),             # feat
                # TODO(synk): pipeline_mode=pl.Buffered(3) on adj if a v5e
                # profile shows exposed DMA after the tile bump.
                pl.BlockSpec((td, ts), lambda d, s: (d, s)),             # adj
                pl.BlockSpec((num_heads, out_feats), lambda d, s: (0, 0)),  # b
            ],
            out_specs=pl.BlockSpec((td, hd), lambda d, s: (d, 0)),
            scratch_shapes=[pltpu.VMEM((td, num_heads), jnp.float32),    # m
                            pltpu.VMEM((td, num_heads), jnp.float32)],   # l
        ),
        compiler_params=pltpu.CompilerParams(
            dimension_semantics=("parallel", "arbitrary"),
            vmem_limit_bytes=vmem_limit),
        cost_estimate=attn_ce,
    )(el_t, er, feat_b, adj_pad, bias)

    return out_p                                          # (n_pad, hd) f32


# --------------------------------------------------------------------------
# Graph_Encoder wrapper (parameter setup + layer loop is plain JAX glue).
# --------------------------------------------------------------------------
class GraphEncoderPallas:
    def __init__(self, num_layers, num_feature, num_hidden, heads,
                 negative_slope=0.2, seed=0):
        self.num_layers = num_layers
        self.num_hidden = num_hidden
        self.heads = heads
        self.negative_slope = negative_slope

        key = jax.random.PRNGKey(seed)
        self.params = []       # f32 params (reference)
        self.prepared = []     # bf16 kernel-side weights, built once
        in_dim = num_feature
        for l in range(num_layers):
            h = heads[l]
            key, kw, kl, kr, kb = jax.random.split(key, 5)
            scale = 1.0 / jnp.sqrt(jnp.float32(in_dim))
            w = jax.random.normal(kw, (in_dim, h * num_hidden),
                                  jnp.float32) * scale
            attn_l = jax.random.normal(kl, (h, num_hidden), jnp.float32) * 0.1
            attn_r = jax.random.normal(kr, (h, num_hidden), jnp.float32) * 0.1
            bias = jax.random.normal(kb, (h, num_hidden), jnp.float32) * 0.01
            self.params.append((w, attn_l, attn_r, bias))

            # Fuse the per-head attention reductions into extra weight columns
            #   el = <feat, a_l> = x @ (W . a_l),  er = <feat, a_r> = x @ (W . a_r)
            # padded to a lane-dense 128-column block.
            w3 = w.reshape(in_dim, h, num_hidden)
            wl = jnp.einsum("fhd,hd->fh", w3, attn_l)
            wr = jnp.einsum("fhd,hd->fh", w3, attn_r)
            sc_pad = _round_up(2 * h, 128)
            wlr = jnp.zeros((in_dim, sc_pad), jnp.float32)
            wlr = wlr.at[:, :h].set(wl).at[:, h:2 * h].set(wr)
            self.prepared.append((w.astype(jnp.bfloat16),
                                  wlr.astype(jnp.bfloat16), bias))
            in_dim = h * num_hidden

    def __call__(self, adj, inputs):
        n = inputs.shape[0]
        td, ts, n_pad = _choose_tiles(n)

        # Pad + cast the adjacency ONCE (shared by every layer); int8 halves
        # the dominant HBM stream vs bf16.
        adj_pad = jnp.zeros((n_pad, n_pad), jnp.int8).at[:n, :n].set(
            adj.astype(jnp.int8))

        # Node padding is carried across layers; padded rows never influence
        # real rows (their adjacency columns are 0) and stay bounded.
        h = jnp.zeros((n_pad, inputs.shape[1]), jnp.bfloat16).at[:n].set(
            inputs.astype(jnp.bfloat16))

        for l in range(self.num_layers):
            w_b, wlr_b, bias = self.prepared[l]
            h_in = h.reshape(n_pad, -1).astype(jnp.bfloat16)   # == flatten(1)
            h = gat_layer(h_in, w_b, wlr_b, bias, adj_pad,
                          num_heads=self.heads[l], out_feats=self.num_hidden,
                          negative_slope=self.negative_slope,
                          td=td, ts=ts, n_pad=n_pad)

        h = h[:n].reshape(n, self.heads[-1], self.num_hidden)
        return [h[:, i] for i in range(self.heads[-1])]


# --------------------------------------------------------------------------
# Pure-JAX reference with the same dtype policy (bf16 MXU inputs, f32
# accumulation / elementwise).
# --------------------------------------------------------------------------
def _ref_layer(x, w, al, ar, b, adj, num_heads, out_feats, neg):
    n, f_in = x.shape
    xb = x.astype(jnp.bfloat16)
    w3 = w.reshape(f_in, num_heads, out_feats)
    wl = jnp.einsum("fhd,hd->fh", w3, al).astype(jnp.bfloat16)
    wr = jnp.einsum("fhd,hd->fh", w3, ar).astype(jnp.bfloat16)
    feat = jnp.dot(xb, w.astype(jnp.bfloat16),
                   preferred_element_type=jnp.float32)
    el = jnp.dot(xb, wl, preferred_element_type=jnp.float32)   # (N, H)
    er = jnp.dot(xb, wr, preferred_element_type=jnp.float32)   # (N, H)
    feat_b = feat.astype(jnp.bfloat16)
    mask = adj > 0
    outs = []
    for h in range(num_heads):
        e = er[:, h:h + 1] + el[:, h][None, :]                 # (dst, src)
        e = jnp.where(e >= 0, e, neg * e)
        e = jnp.where(mask, e, -1e30)
        m = jnp.max(e, axis=-1, keepdims=True)
        p = jnp.where(mask, jnp.exp(e - m), 0.0)
        s = jnp.sum(p, axis=-1, keepdims=True)
        fh = feat_b[:, h * out_feats:(h + 1) * out_feats]
        pv = jnp.dot(p.astype(jnp.bfloat16), fh,
                     preferred_element_type=jnp.float32)
        rst = pv / jnp.maximum(s, 1e-30) + b[h][None, :]
        rst = jnp.where(rst > 0, rst, jnp.exp(rst) - 1.0)
        outs.append(rst)
    return jnp.concatenate(outs, axis=-1)


def reference_encoder(enc, adj, inputs):
    h = inputs
    n = inputs.shape[0]
    for l in range(enc.num_layers):
        w, al, ar, b = enc.params[l]
        h = _ref_layer(h.reshape(n, -1), w, al, ar, b, adj,
                       enc.heads[l], enc.num_hidden, enc.negative_slope)
    h = h.reshape(n, enc.heads[-1], enc.num_hidden)
    return [h[:, i] for i in range(enc.heads[-1])]


if __name__ == "__main__":
    num_layers = 2
    num_feature = 16
    num_hidden = 16
    heads = [4, 4]
    n_nodes = 16

    key = jax.random.PRNGKey(0)
    k_x, k_adj = jax.random.split(key)
    inputs = jax.random.normal(k_x, (n_nodes, num_feature), jnp.float32)

    # deterministic random sparse graph + self loops (adj[dst, src])
    adj = (jax.random.uniform(k_adj, (n_nodes, n_nodes)) < 0.3).astype(jnp.float32)
    adj = jnp.maximum(adj, jnp.eye(n_nodes, dtype=jnp.float32))

    enc = GraphEncoderPallas(num_layers, num_feature, num_hidden, heads,
                             negative_slope=0.2, seed=0)

    outs = enc(adj, inputs)            # list of (N, num_hidden), one per head
    outs = [jax.block_until_ready(o) for o in outs]

    refs = reference_encoder(enc, adj, inputs)
    for o, r in zip(outs, refs):
        assert o.shape == (n_nodes, num_hidden)
        assert jnp.allclose(o, r, atol=2e-2, rtol=2e-2), "mismatch vs reference"

    print("KERNEL_OK")
</pallas_src>

<mosaic_0001>
module attributes {stable_mosaic.version = 11 : i64} {
  func.func @_gat_proj_kernel(%arg0: i32, %arg1: memref<128x16xbf16, #tpu.memory_space<vmem>>, %arg2: memref<16x64xbf16, #tpu.memory_space<vmem>>, %arg3: memref<16x128xbf16, #tpu.memory_space<vmem>>, %arg4: memref<128x64xbf16, #tpu.memory_space<vmem>>, %arg5: memref<128x128xf32, #tpu.memory_space<vmem>>) attributes {dimension_semantics = [#tpu.dimension_semantics<parallel>], iteration_bounds = array<i64: 1>, scalar_prefetch = 0 : i64, scratch_operands = 0 : i64, tpu.core_type = #tpu.core_type<tc>, window_params = [{transform_indices = @transform_0, window_bounds = array<i64: 128, 16>}, {pipeline_mode = #tpu.pipeline_mode<synchronous>, transform_indices = @transform_1, window_bounds = array<i64: 16, 64>}, {pipeline_mode = #tpu.pipeline_mode<synchronous>, transform_indices = @transform_2, window_bounds = array<i64: 16, 128>}, {transform_indices = @transform_3, window_bounds = array<i64: 128, 64>}, {transform_indices = @transform_4, window_bounds = array<i64: 128, 128>}]} {
    %c0 = arith.constant 0 : index
    %c0_0 = arith.constant 0 : index
    %0 = vector.load %arg1[%c0, %c0_0] : memref<128x16xbf16, #tpu.memory_space<vmem>>, vector<128x16xbf16>
    %c0_1 = arith.constant 0 : index
    %c0_2 = arith.constant 0 : index
    %1 = vector.load %arg2[%c0_1, %c0_2] : memref<16x64xbf16, #tpu.memory_space<vmem>>, vector<16x64xbf16>
    %cst = arith.constant dense<0.000000e+00> : vector<128x64xf32>
    %2 = tpu.matmul %0, %1, %cst {dimension_numbers = #tpu.dot_dimension_numbers<[1], [0], [0], [1], [0, 0, 1, 1], [], []>} : vector<128x16xbf16>, vector<16x64xbf16>, vector<128x64xf32> -> vector<128x64xf32>
    %3 = arith.truncf %2 : vector<128x64xf32> to vector<128x64xbf16>
    %c0_3 = arith.constant 0 : index
    %c0_4 = arith.constant 0 : index
    %4 = vector.load %arg4[%c0_3, %c0_4] : memref<128x64xbf16, #tpu.memory_space<vmem>>, vector<128x64xbf16>
    tpu.vector_store %arg4[%c0_3, %c0_4], %3 {strides = array<i32>} : memref<128x64xbf16, #tpu.memory_space<vmem>>, vector<128x64xbf16>,
    %c0_5 = arith.constant 0 : index
    %c0_6 = arith.constant 0 : index
    %5 = vector.load %arg3[%c0_5, %c0_6] : memref<16x128xbf16, #tpu.memory_space<vmem>>, vector<16x128xbf16>
    %cst_7 = arith.constant dense<0.000000e+00> : vector<128x128xf32>
    %6 = tpu.matmul %0, %5, %cst_7 {dimension_numbers = #tpu.dot_dimension_numbers<[1], [0], [0], [1], [0, 0, 1, 1], [], []>} : vector<128x16xbf16>, vector<16x128xbf16>, vector<128x128xf32> -> vector<128x128xf32>
    %c0_8 = arith.constant 0 : index
    %c0_9 = arith.constant 0 : index
    %7 = vector.load %arg5[%c0_8, %c0_9] : memref<128x128xf32, #tpu.memory_space<vmem>>, vector<128x128xf32>
    tpu.vector_store %arg5[%c0_8, %c0_9], %6 {strides = array<i32>} : memref<128x128xf32, #tpu.memory_space<vmem>>, vector<128x128xf32>,
    return
  }
  func.func @transform_0(%arg0: i32) -> (i32, i32) {
    %c0_i32 = arith.constant 0 : i32
    %c0_i32_0 = arith.constant 0 : i32
    return %arg0, %c0_i32 : i32, i32
  }
  func.func @transform_1(%arg0: i32) -> (i32, i32) {
    %c0_i32 = arith.constant 0 : i32
    %c0_i32_0 = arith.constant 0 : i32
    %c0_i32_1 = arith.constant 0 : i32
    return %c0_i32, %c0_i32_0 : i32, i32
  }
  func.func @transform_2(%arg0: i32) -> (i32, i32) {
    %c0_i32 = arith.constant 0 : i32
    %c0_i32_0 = arith.constant 0 : i32
    %c0_i32_1 = arith.constant 0 : i32
    return %c0_i32, %c0_i32_0 : i32, i32
  }
  func.func @transform_3(%arg0: i32) -> (i32, i32) {
    %c0_i32 = arith.constant 0 : i32
    %c0_i32_0 = arith.constant 0 : i32
    return %arg0, %c0_i32 : i32, i32
  }
  func.func @transform_4(%arg0: i32) -> (i32, i32) {
    %c0_i32 = arith.constant 0 : i32
    %c0_i32_0 = arith.constant 0 : i32
    return %arg0, %c0_i32 : i32, i32
  }
}

</mosaic_0001>

<bundles_post_ra>
// kernel: tpu_custom_call.1
= control target key start
LH: loop header
LB: loop body
LE: loop exit
PB: predicated region body
PF: predicated region fallthrough
CT: control target
= control target key end

     0   :  { %vm82_vm0 = vcmask 130048   ;;  %s522_s0 = inlined_call_operand.vmem [shape: bf16[128,16], index: 0, kind: input, shape index: {}]   ;;  %s523_s1 = inlined_call_operand.vmem [shape: bf16[16,64], index: 1, kind: input, shape index: {}]   ;;  %s524_s2 = inlined_call_operand.vmem [shape: bf16[16,128], index: 2, kind: input, shape index: {}]   ;;  %s525_s3 = inlined_call_operand.vmem [shape: bf16[128,64], index: 3, kind: output, shape index: {0}]   ;;  %s526_s4 = inlined_call_operand.hbm [shape: f32[128,128], index: 4, kind: output, shape index: {1}]  }
   0x1   :  { %v348_v0 = vld [vmem:[%s523_s1] sm:$0xff] }
   0x2   :  { %v349_v1 = vld [vmem:[%s524_s2] sm:$0xff]  ;;  %114 = vmatpush.bf16.msra.mxu0 %v348_v0  ;;  %350 = vmatpush.bf16.msra.mxu2 %v348_v0 }
   0x3   :  { %v340_v2 = vld [vmem:[%s522_s0] sm:$0xff] }
   0x4   :  { %v344_v3 = vld [vmem:[%s522_s0 + $0x20] sm:$0xff] }
   0x5   :  { %10 = vsyncpa [#allocation3], 0  ;;  %204 = vmatpush.bf16.msra.mxu1 %v349_v1  ;;  %351 = vmatpush.bf16.msra.mxu3 %v349_v1  ;;  %v341_v4 = vld [vmem:[%s522_s0 + $0x8] sm:$0xff]  ;;  %v342_v6 = vld [vmem:[%s522_s0 + $0x10] sm:$0xff]  ;;  %vm172_vm1 = vcmask 519168   ;;  %s381_s8 = smov [#allocation2]  }
   0x6   :  { %320 = vmatmul.msk.bf16.vlgmr.msra.gmra.mxu0 %vm82_vm0, %v340_v2  ;;  %324 = vmatmul.msk.bf16.vlgmr.msra.gmra.mxu2 %vm82_vm0, %v344_v3  ;;  %v345_v5 = vld [vmem:[%s522_s0 + $0x28] sm:$0xff]  ;;  %v346_v7 = vld [vmem:[%s522_s0 + $0x30] sm:$0xff]  ;;  %v343_v8 = vld [vmem:[%s522_s0 + $0x18] sm:$0xff]  ;;  %s270_s11 = sshll.u32 %s526_s4, 4  ;;  %s382_s14 = smov 128   ;;  %s271_s11 = int_to_ptr.hbm [resolvable:$true] %s270_s11 }
   0x7   :  { %v347_v9 = vld [vmem:[%s522_s0 + $0x38] sm:$0xff]  ;;  %s268_s0 = sshll.u32 %s381_s8, 4  ;;  %s383_s15 = smov 8   ;;  %s269_s0 = int_to_ptr.vmem [resolvable:$true] %s268_s0 }
   0x8   :  { %332 = vmatmul.msk.bf16.vlgmr.msra.gmra.mxu1 %vm82_vm0, %v340_v2  ;;  %336 = vmatmul.msk.bf16.vlgmr.msra.gmra.mxu3 %vm82_vm0, %v344_v3 }
  0x16   :  { %321 = vmatmul.msk.bf16.gmra.mxu0 %vm82_vm0, %v341_v4  ;;  %325 = vmatmul.msk.bf16.gmra.mxu2 %vm82_vm0, %v345_v5 }
  0x18   :  { %333 = vmatmul.msk.bf16.gmra.mxu1 %vm82_vm0, %v341_v4  ;;  %337 = vmatmul.msk.bf16.gmra.mxu3 %vm82_vm0, %v345_v5 }
  0x26   :  { %322 = vmatmul.msk.bf16.gmra.mxu0 %vm82_vm0, %v342_v6  ;;  %326 = vmatmul.msk.bf16.gmra.mxu2 %vm82_vm0, %v346_v7 }
  0x28   :  { %334 = vmatmul.msk.bf16.gmra.mxu1 %vm82_vm0, %v342_v6  ;;  %338 = vmatmul.msk.bf16.gmra.mxu3 %vm82_vm0, %v346_v7 }
  0x36   :  { %323 = vmatmul.msk.bf16.gmra.mxu0 %vm82_vm0, %v343_v8  ;;  %327 = vmatmul.msk.bf16.gmra.mxu2 %vm82_vm0, %v347_v9 }
  0x38   :  { %335 = vmatmul.msk.bf16.gmra.mxu1 %vm82_vm0, %v343_v8  ;;  %339 = vmatmul.msk.bf16.gmra.mxu3 %vm82_vm0, %v347_v9 }
  0x83   :  { %v116_v10 = vpop.f32.mrf.mxu0 }
  0x84   :  { %v156_v11 = vpack.c.bf16 %v116_v10, %v116_v10 }
  0x85   :  { %v206_v12 = vpop.f32.mrf.mxu1 }
  0x86   :  { %246 = vst [vmem:[#allocation2] sm:$0xff] %v206_v12 }
  0x87   :  { %173 = vst.msk [vmem:[%s525_s3] sm:$0xf] %vm172_vm1, %v156_v11 }
  0x89   :  { %v136_v13 = vpop.f32.mrf.mxu2 }
  0x8a   :  { %v164_v14 = vpack.c.bf16 %v136_v13, %v136_v13 }
  0x8b   :  { %v226_v15 = vpop.f32.mrf.mxu3  ;;  %v118_v16 = vpop.f32.mrf.mxu0 }
  0x8c   :  { %254 = vst [vmem:[#allocation2 + $0x40] sm:$0xff] %v226_v15  ;;  %v157_v17 = vpack.c.bf16 %v118_v16, %v118_v16 }
  0x8d   :  { %181 = vst.msk [vmem:[%s525_s3 + $0x20] sm:$0xf] %vm172_vm1, %v164_v14  ;;  %v208_v18 = vpop.f32.mrf.mxu1 }
  0x8e   :  { %247 = vst [vmem:[#allocation2 + $0x8] sm:$0xff] %v208_v18 }
  0x8f   :  { %174 = vst.msk [vmem:[%s525_s3 + $0x4] sm:$0xf] %vm172_vm1, %v157_v17 }
  0x91   :  { %v138_v19 = vpop.f32.mrf.mxu2 }
  0x92   :  { %v165_v20 = vpack.c.bf16 %v138_v19, %v138_v19 }
  0x93   :  { %v228_v21 = vpop.f32.mrf.mxu3  ;;  %v121_v22 = vpop.f32.mrf.mxu0 }
  0x94   :  { %255 = vst [vmem:[#allocation2 + $0x48] sm:$0xff] %v228_v21  ;;  %v158_v23 = vpack.c.bf16 %v121_v22, %v121_v22 }
  0x95   :  { %182 = vst.msk [vmem:[%s525_s3 + $0x24] sm:$0xf] %vm172_vm1, %v165_v20  ;;  %v211_v24 = vpop.f32.mrf.mxu1 }
  0x96   :  { %248 = vst [vmem:[#allocation2 + $0x10] sm:$0xff] %v211_v24 }
  0x97   :  { %175 = vst.msk [vmem:[%s525_s3 + $0x8] sm:$0xf] %vm172_vm1, %v158_v23 }
  0x99   :  { %v141_v25 = vpop.f32.mrf.mxu2 }
  0x9a   :  { %v166_v26 = vpack.c.bf16 %v141_v25, %v141_v25 }
  0x9b   :  { %v231_v27 = vpop.f32.mrf.mxu3  ;;  %v123_v28 = vpop.f32.mrf.mxu0 }
  0x9c   :  { %256 = vst [vmem:[#allocation2 + $0x50] sm:$0xff] %v231_v27  ;;  %v159_v29 = vpack.c.bf16 %v123_v28, %v123_v28 }
  0x9d   :  { %183 = vst.msk [vmem:[%s525_s3 + $0x28] sm:$0xf] %vm172_vm1, %v166_v26  ;;  %v213_v30 = vpop.f32.mrf.mxu1 }
  0x9e   :  { %249 = vst [vmem:[#allocation2 + $0x18] sm:$0xff] %v213_v30 }
  0x9f   :  { %176 = vst.msk [vmem:[%s525_s3 + $0xc] sm:$0xf] %vm172_vm1, %v159_v29 }
  0xa1   :  { %v143_v31 = vpop.f32.mrf.mxu2 }
  0xa2   :  { %v167_v32 = vpack.c.bf16 %v143_v31, %v143_v31 }
  0xa3   :  { %v233_v33 = vpop.f32.mrf.mxu3  ;;  %v126_v34 = vpop.f32.mrf.mxu0 }
  0xa4   :  { %257 = vst [vmem:[#allocation2 + $0x58] sm:$0xff] %v233_v33  ;;  %v160_v35 = vpack.c.bf16 %v126_v34, %v126_v34 }
  0xa5   :  { %184 = vst.msk [vmem:[%s525_s3 + $0x2c] sm:$0xf] %vm172_vm1, %v167_v32  ;;  %v216_v36 = vpop.f32.mrf.mxu1 }
  0xa6   :  { %250 = vst [vmem:[#allocation2 + $0x20] sm:$0xff] %v216_v36 }
  0xa7   :  { %177 = vst.msk [vmem:[%s525_s3 + $0x10] sm:$0xf] %vm172_vm1, %v160_v35 }
  0xa9   :  { %v146_v37 = vpop.f32.mrf.mxu2 }
  0xaa   :  { %v168_v38 = vpack.c.bf16 %v146_v37, %v146_v37 }
  0xab   :  { %v236_v39 = vpop.f32.mrf.mxu3  ;;  %v128_v40 = vpop.f32.mrf.mxu0 }
  0xac   :  { %258 = vst [vmem:[#allocation2 + $0x60] sm:$0xff] %v236_v39  ;;  %v161_v41 = vpack.c.bf16 %v128_v40, %v128_v40 }
  0xad   :  { %185 = vst.msk [vmem:[%s525_s3 + $0x30] sm:$0xf] %vm172_vm1, %v168_v38  ;;  %v218_v42 = vpop.f32.mrf.mxu1 }
  0xae   :  { %251 = vst [vmem:[#allocation2 + $0x28] sm:$0xff] %v218_v42 }
  0xaf   :  { %178 = vst.msk [vmem:[%s525_s3 + $0x14] sm:$0xf] %vm172_vm1, %v161_v41 }
  0xb1   :  { %v148_v43 = vpop.f32.mrf.mxu2 }
  0xb2   :  { %v169_v44 = vpack.c.bf16 %v148_v43, %v148_v43 }
  0xb3   :  { %v238_v45 = vpop.f32.mrf.mxu3  ;;  %v131_v46 = vpop.f32.mrf.mxu0 }
  0xb4   :  { %259 = vst [vmem:[#allocation2 + $0x68] sm:$0xff] %v238_v45  ;;  %v162_v47 = vpack.c.bf16 %v131_v46, %v131_v46 }
  0xb5   :  { %186 = vst.msk [vmem:[%s525_s3 + $0x34] sm:$0xf] %vm172_vm1, %v169_v44  ;;  %v221_v48 = vpop.f32.mrf.mxu1 }
  0xb6   :  { %252 = vst [vmem:[#allocation2 + $0x30] sm:$0xff] %v221_v48 }
  0xb7   :  { %179 = vst.msk [vmem:[%s525_s3 + $0x18] sm:$0xf] %vm172_vm1, %v162_v47 }
  0xb9   :  { %v151_v49 = vpop.f32.mrf.mxu2 }
  0xba   :  { %v170_v50 = vpack.c.bf16 %v151_v49, %v151_v49 }
  0xbb   :  { %v241_v51 = vpop.f32.mrf.mxu3  ;;  %v133_v52 = vpop.f32.mrf.mxu0 }
  0xbc   :  { %260 = vst [vmem:[#allocation2 + $0x70] sm:$0xff] %v241_v51  ;;  %v163_v53 = vpack.c.bf16 %v133_v52, %v133_v52 }
  0xbd   :  { %187 = vst.msk [vmem:[%s525_s3 + $0x38] sm:$0xf] %vm172_vm1, %v170_v50  ;;  %v223_v54 = vpop.f32.mrf.mxu1 }
  0xbe   :  { %253 = vst [vmem:[#allocation2 + $0x38] sm:$0xff] %v223_v54 }
  0xbf   :  { %180 = vst.msk [vmem:[%s525_s3 + $0x1c] sm:$0xf] %vm172_vm1, %v163_v53 }
  0xc1   :  { %v153_v55 = vpop.f32.mrf.mxu2 }
  0xc2   :  { %v171_v56 = vpack.c.bf16 %v153_v55, %v153_v55 }
  0xc3   :  { %v243_v57 = vpop.f32.mrf.mxu3 }
  0xc4   :  { %261 = vst [vmem:[#allocation2 + $0x78] sm:$0xff] %v243_v57 }
  0xc5   :  { %188 = vst.msk [vmem:[%s525_s3 + $0x3c] sm:$0xf] %vm172_vm1, %v171_v56 }
  0xc6   :  { %276 = dma.vmem_to_hbm [thread:$0]  %s269_s0, 2048, %s271_s11, [#allocation3], %s382_s14, %s382_s14, %s383_s15  }
  0xc7   :  { %379 = dma.done.wait [#allocation3], 2048  }
  0xc8   :  { %380 = vsyncadd [#allocation3], 4294965248 }
  0xc9   :  { %283 = vsyncpa [#allocation3], 1 }

</bundles_post_ra>
